<compile_context>
chip_gen: v5e
topology: v5e:2x2
jax: 0.10.0
libtpu: 0.0.40
codegen_flags: <defaults>
</compile_context>

<pallas_src>
import jax
import jax.numpy as jnp
import numpy as np
from jax.experimental import pallas as pl
from jax.experimental.pallas import tpu as pltpu


# ----------------------------------------------------------------------------
# Forward pass: exact reference semantics (no tensor compute, no device work).
# ----------------------------------------------------------------------------
def dqn_learner_forward(x):
    """Pallas/JAX equivalent of DQNLearner.forward: ignores x, returns ''."""
    # TODO(synk): reference forward returns the Python string '' and performs
    # no tensor computation; there is nothing to lower to a Pallas kernel here.
    del x
    return ''


# ----------------------------------------------------------------------------
# Verification-only Pallas identity kernel (tiled, aliased, VMEM-budgeted).
# ----------------------------------------------------------------------------
def _copy_kernel(x_ref, o_ref):
    # One tile: vector load + vector store (mem-bound; VPU untouched).
    o_ref[...] = x_ref[...]


def _pallas_identity(x, *, max_block_rows=512):
    """Tiled Pallas identity copy of a [B, N] array (used only for testing)."""
    B, N = x.shape
    itemsize = jnp.dtype(x.dtype).itemsize

    # Cap per-step footprint: ~2 in-bufs + 2 out-bufs per block; stay well
    # under the smallest scoped-VMEM default (v5e: 16 MiB) -> budget 8 MiB.
    budget_bytes = 8 * 1024 * 1024
    bytes_per_row = max(1, N * itemsize)
    rows_by_vmem = max(8, (budget_bytes // (4 * bytes_per_row)) // 8 * 8)
    max_rows = min(max_block_rows, rows_by_vmem)

    # Block rows: multiple of 8 that evenly divides B, else full extent
    # (full-extent last-two dims always satisfy the (8,128) constraint).
    if B % 8 == 0 and B > max_rows:
        block_rows = (max_rows // 8) * 8
        while B % block_rows != 0:
            block_rows -= 8  # terminates at 8, which divides B
    else:
        block_rows = B

    grid = (B // block_rows,)

    return pl.pallas_call(
        _copy_kernel,
        out_shape=jax.ShapeDtypeStruct((B, N), x.dtype),
        grid=grid,
        in_specs=[pl.BlockSpec((block_rows, N), lambda i: (i, 0))],
        out_specs=pl.BlockSpec((block_rows, N), lambda i: (i, 0)),
        # Alias output onto input: no separate output HBM buffer / writeback.
        input_output_aliases={0: 0},
        compiler_params=pltpu.CompilerParams(
            # Independent row-blocks -> shard across both TCs on v7x.
            dimension_semantics=("parallel",),
        ),
    )(x)


if __name__ == "__main__":
    key = jax.random.PRNGKey(0)
    batch = 8
    n_observations = 128  # (8, 128)-aligned flat observation size
    x = jax.random.normal(key, (batch, n_observations), dtype=jnp.float32)

    # Keep a host-side reference BEFORE the aliased call (input is donated).
    x_host = np.asarray(jax.device_get(x))

    # 1) Forward semantics: module returns '' regardless of input, zero work.
    out_str = dqn_learner_forward(x)
    assert out_str == ''

    # 2) Pallas path verification: tiled identity copy round-trips exactly.
    y = _pallas_identity(x)
    jax.block_until_ready(y)
    y_host = np.asarray(jax.device_get(y))
    assert y_host.shape == x_host.shape and y_host.dtype == x_host.dtype
    assert np.allclose(y_host, x_host)

    print("KERNEL_OK")
</pallas_src>

<mosaic_0001>
module attributes {stable_mosaic.version = 11 : i64} {
  func.func @_copy_kernel(%arg0: i32, %arg1: memref<8x128xf32, #tpu.memory_space<vmem>>, %arg2: memref<8x128xf32, #tpu.memory_space<vmem>>) attributes {dimension_semantics = [#tpu.dimension_semantics<parallel>], iteration_bounds = array<i64: 1>, scalar_prefetch = 0 : i64, scratch_operands = 0 : i64, tpu.core_type = #tpu.core_type<tc>, window_params = [{transform_indices = @transform_0, window_bounds = array<i64: 8, 128>}, {transform_indices = @transform_1, window_bounds = array<i64: 8, 128>}]} {
    %c0 = arith.constant 0 : index
    %c0_0 = arith.constant 0 : index
    %0 = vector.load %arg1[%c0, %c0_0] : memref<8x128xf32, #tpu.memory_space<vmem>>, vector<8x128xf32>
    %c0_1 = arith.constant 0 : index
    %c0_2 = arith.constant 0 : index
    %1 = vector.load %arg2[%c0_1, %c0_2] : memref<8x128xf32, #tpu.memory_space<vmem>>, vector<8x128xf32>
    tpu.vector_store %arg2[%c0_1, %c0_2], %0 {strides = array<i32>} : memref<8x128xf32, #tpu.memory_space<vmem>>, vector<8x128xf32>,
    return
  }
  func.func @transform_0(%arg0: i32) -> (i32, i32) {
    %c0_i32 = arith.constant 0 : i32
    %c0_i32_0 = arith.constant 0 : i32
    return %arg0, %c0_i32 : i32, i32
  }
  func.func @transform_1(%arg0: i32) -> (i32, i32) {
    %c0_i32 = arith.constant 0 : i32
    %c0_i32_0 = arith.constant 0 : i32
    return %arg0, %c0_i32 : i32, i32
  }
}

</mosaic_0001>

<bundles_post_ra>
// kernel: tpu_custom_call.1
= control target key start
LH: loop header
LB: loop body
LE: loop exit
PB: predicated region body
PF: predicated region fallthrough
CT: control target
= control target key end

     0   :  { %6 = vsyncpa [#allocation3], 0  ;;  %s114_s0 = inlined_call_operand.hbm [shape: f32[8,128], index: 0, kind: input, shape index: {}, may-alias: {0,1}]   ;;  %s115_s1 = inlined_call_operand.hbm [shape: f32[8,128], index: 1, kind: output, shape index: {}, may-alias: {0,1}]  }
   0x1   :  { %7 = vsyncpa [#allocation4], 0  ;;  %s13_s8 = sshll.u32 %s114_s0, 4  ;;  %s96_s9 = smov [#allocation2]   ;;  %s14_s8 = int_to_ptr.hbm [resolvable:$true] %s13_s8 }
   0x2   :  { %s15_s10 = sshll.u32 %s96_s9, 4  ;;  %s16_s10 = int_to_ptr.vmem [resolvable:$true] %s15_s10 }
   0x3   :  { %18 = dma.hbm_to_vmem [thread:$0]  %s14_s8, 128, %s16_s10, [#allocation3]  }
   0x4   :  { %92 = dma.done.wait [#allocation3], 128  }
   0x5   :  { %93 = vsyncadd [#allocation3], 4294967168  ;;  %s97_s11 = smov [#allocation5]   ;;  %s32_s15 = sshll.u32 %s115_s1, 4  ;;  %v23_v0 = vld [vmem:[#allocation2] sm:$0xff]  ;;  %s33_s15 = int_to_ptr.hbm [resolvable:$true] %s32_s15 }
   0x6   :  { %s30_s12 = sshll.u32 %s97_s11, 4  ;;  %24 = vst [vmem:[#allocation5] sm:$0xff] %v23_v0  ;;  %s31_s12 = int_to_ptr.vmem [resolvable:$true] %s30_s12 }
   0x7   :  { %35 = dma.vmem_to_hbm [thread:$0]  %s31_s12, 128, %s33_s15, [#allocation4]  }
   0x8   :  { %94 = dma.done.wait [#allocation4], 128  }
   0x9   :  { %95 = vsyncadd [#allocation4], 4294967168 }
   0xa   :  { %40 = vsyncpa [#allocation3], 1 }
   0xb   :  { %41 = vsyncpa [#allocation4], 1 }

</bundles_post_ra>
